<compile_context>
chip_gen: v5e
topology: v5e:2x2
jax: 0.10.0
libtpu: 0.0.40
codegen_flags: <defaults>
</compile_context>

<pallas_src>
import random

import numpy as np
import jax
import jax.numpy as jnp
from jax.experimental import pallas as pl
from jax.experimental.pallas import tpu as pltpu


def _round_up(x: int, m: int) -> int:
    return ((x + m - 1) // m) * m


def _gcn_agg_kernel(mask_ref, emb_ref, out_ref, acc_ref, cnt_ref):
    # mask_ref: (tm, tk) bf16   emb_ref: (tk, Dp) bf16   out_ref: (tm, Dp) f32
    # acc_ref:  (tm, Dp) f32    cnt_ref: (tm, 1)  f32
    k = pl.program_id(1)

    @pl.when(k == 0)
    def _():
        acc_ref[...] = jnp.zeros_like(acc_ref)
        cnt_ref[...] = jnp.zeros_like(cnt_ref)

    mask = mask_ref[...]
    # Global degree = sum of the row across ALL K tiles (accumulated in f32).
    cnt_ref[...] += jnp.sum(mask.astype(jnp.float32), axis=1, keepdims=True)
    # bf16 x bf16 -> f32 accumulate on the MXU.
    acc_ref[...] += jnp.dot(mask, emb_ref[...],
                            preferred_element_type=jnp.float32)

    @pl.when(k == pl.num_programs(1) - 1)
    def _():
        # Normalize the (tm, Dp) accumulator (cheap) instead of the (tm, tk)
        # mask.  Real rows always contain the node itself, so count >= 1;
        # max(.,1) only protects the zero pad rows (which are sliced away).
        inv = pl.reciprocal(jnp.maximum(cnt_ref[...], 1.0), approx=True)
        out_ref[...] = (acc_ref[...] * inv).astype(out_ref.dtype)


def gcn_aggregate_pallas(mask_bf16: jax.Array, emb_bf16: jax.Array,
                         *, tm: int, tk: int) -> jax.Array:
    """mask: (Bp, Up) bf16 0/1 adjacency; emb: (Up, Dp) bf16. Returns (Bp, Dp) f32."""
    Bp, Up = mask_bf16.shape
    Up2, Dp = emb_bf16.shape
    assert Up == Up2 and Bp % tm == 0 and Up % tk == 0 and Dp % 128 == 0

    grid = (Bp // tm, Up // tk)
    return pl.pallas_call(
        _gcn_agg_kernel,
        out_shape=jax.ShapeDtypeStruct((Bp, Dp), jnp.float32),
        grid_spec=pltpu.PrefetchScalarGridSpec(
            num_scalar_prefetch=0,
            grid=grid,
            in_specs=[
                pl.BlockSpec((tm, tk), lambda i, k: (i, k)),
                pl.BlockSpec((tk, Dp), lambda i, k: (k, 0)),
            ],
            out_specs=pl.BlockSpec((tm, Dp), lambda i, k: (i, 0)),
            scratch_shapes=[
                pltpu.VMEM((tm, Dp), jnp.float32),   # matmul accumulator
                pltpu.VMEM((tm, 1), jnp.float32),    # per-row degree accumulator
            ],
        ),
        compiler_params=pltpu.CompilerParams(
            # B-row tiles are independent -> shard across TensorCores (v7x);
            # K (=U) axis carries the accumulator -> arbitrary.
            dimension_semantics=("parallel", "arbitrary"),
            # Tiles are sized to stay well under v7x's 64 MiB physical VMEM.
            vmem_limit_bytes=32 * 1024 * 1024,
        ),
    )(mask_bf16, emb_bf16)


class GCNAggregatorJAX:
    """Mirror of the PyTorch GCNAggregator. `feature_table` is the embedding table."""

    def __init__(self, feature_table: jax.Array, feat_dim: int, num_sample: int):
        self.feature_table = feature_table  # (num_total_nodes, feat_dim) f32
        self.feat_dim = feat_dim
        self.num_sample = num_sample
        # fc1 / relu exist in the torch module's __init__ but are unused in
        # forward(); initialize deterministically anyway for parity.
        key = jax.random.PRNGKey(42)
        kw, kb = jax.random.split(key)
        bound = 1.0 / (feat_dim ** 0.5)
        self.fc1_w = jax.random.uniform(kw, (feat_dim, feat_dim), jnp.float32,
                                        -bound, bound)
        self.fc1_b = jax.random.uniform(kb, (feat_dim,), jnp.float32,
                                        -bound, bound)

    # ---- host-side glue: sampling + mask/embedding construction (torch logic)
    def _build(self, nodes, to_neighs, rng: random.Random):
        _set = set
        _sample = rng.sample
        samp_neighs = [
            _set(_sample(sorted(to_neigh), self.num_sample))
            if len(to_neigh) >= self.num_sample else _set(to_neigh)
            for to_neigh in to_neighs
        ]
        samp_neighs = [samp_neigh.union(_set([nodes[i]]))
                       for i, samp_neigh in enumerate(samp_neighs)]
        unique_nodes_list = list(set.union(*samp_neighs))
        unique_nodes = {n: i for i, n in enumerate(unique_nodes_list)}

        B = len(samp_neighs)
        U = len(unique_nodes_list)

        mask_np = np.zeros((B, U), dtype=np.float32)
        column_indices = [unique_nodes[n] for samp_neigh in samp_neighs
                          for n in samp_neigh]
        row_indices = [i for i in range(len(samp_neighs))
                       for _ in range(len(samp_neighs[i]))]
        mask_np[row_indices, column_indices] = 1.0

        idx = jnp.asarray(np.asarray(unique_nodes_list, dtype=np.int32))
        embed_matrix = jnp.take(self.feature_table, idx, axis=0)  # (U, D) f32
        return mask_np, embed_matrix

    def forward(self, nodes, to_neighs, rng: random.Random):
        mask_np, embed_matrix = self._build(nodes, to_neighs, rng)
        B, U = mask_np.shape
        D = self.feat_dim

        # ---- padding: U to the K-tile, B to the M-tile, D to lane width (128)
        B16 = _round_up(B, 16)
        tm = min(256, B16)
        B_pad = _round_up(B16, tm)
        U128 = _round_up(U, 128)
        tk = min(1024, U128)
        U_pad = _round_up(U128, tk)
        D_pad = _round_up(D, 128)

        mask_pad = np.zeros((B_pad, U_pad), dtype=np.float32)
        mask_pad[:B, :U] = mask_np
        mask_bf16 = jnp.asarray(mask_pad).astype(jnp.bfloat16)

        emb_pad = jnp.pad(embed_matrix, ((0, U_pad - U), (0, D_pad - D)))
        emb_bf16 = emb_pad.astype(jnp.bfloat16)

        # ---- Pallas hot path: tiled (degree-sum + matmul + normalize)
        out_pad = gcn_aggregate_pallas(mask_bf16, emb_bf16, tm=tm, tk=tk)
        return out_pad[:B, :D]


def _reference(mask, embed_matrix):
    num_neigh = jnp.sum(mask, axis=1, keepdims=True)
    return (mask / num_neigh) @ embed_matrix


if __name__ == "__main__":
    NUM_TOTAL_NODES = 64
    FEAT_DIM = 32
    NUM_SAMPLE = 4
    BATCH = 6

    key = jax.random.PRNGKey(0)
    feature_table = jax.random.normal(
        key, (NUM_TOTAL_NODES, FEAT_DIM), dtype=jnp.float32)

    # deterministic synthetic graph
    graph_rng = random.Random(0)
    nodes = list(range(BATCH))
    to_neighs = []
    for _ in range(BATCH):
        deg = graph_rng.randint(2, 7)
        to_neighs.append(set(graph_rng.sample(range(NUM_TOTAL_NODES), deg)))

    agg = GCNAggregatorJAX(feature_table, FEAT_DIM, NUM_SAMPLE)
    out = agg.forward(nodes, to_neighs, random.Random(1))
    out = jax.block_until_ready(out)

    # pure-JAX f32 reference on the identical mask/embedding (same sampling rng)
    mask_np, embed_matrix = agg._build(nodes, to_neighs, random.Random(1))
    ref = _reference(jnp.asarray(mask_np), embed_matrix)

    assert out.shape == (BATCH, FEAT_DIM)
    # bf16 inputs + approx reciprocal -> compare at bf16-level tolerance.
    assert jnp.allclose(out, ref, atol=2e-2, rtol=2e-2), (
        float(jnp.max(jnp.abs(out - ref))))
    print("KERNEL_OK")
</pallas_src>

<mosaic_0001>
module attributes {stable_mosaic.version = 11 : i64} {
  func.func @_gcn_agg_kernel(%arg0: i32, %arg1: i32, %arg2: memref<16x128xbf16, #tpu.memory_space<vmem>>, %arg3: memref<128x128xbf16, #tpu.memory_space<vmem>>, %arg4: memref<16x128xf32, #tpu.memory_space<vmem>>, %arg5: memref<16x128xf32, #tpu.memory_space<vmem>>, %arg6: memref<16x1xf32, #tpu.memory_space<vmem>>) attributes {dimension_semantics = [#tpu.dimension_semantics<parallel>, #tpu.dimension_semantics<arbitrary>], iteration_bounds = array<i64: 1, 1>, scalar_prefetch = 0 : i64, scratch_operands = 2 : i64, tpu.core_type = #tpu.core_type<tc>, window_params = [{transform_indices = @transform_0, window_bounds = array<i64: 16, 128>}, {transform_indices = @transform_1, window_bounds = array<i64: 128, 128>}, {transform_indices = @transform_2, window_bounds = array<i64: 16, 128>}]} {
    %c0_i32 = arith.constant 0 : i32
    %0 = arith.cmpi eq, %arg1, %c0_i32 : i32
    %1 = arith.extui %0 : i1 to i32
    %c0_i32_0 = arith.constant 0 : i32
    %2 = arith.cmpi ne, %1, %c0_i32_0 : i32
    scf.if %2 {
      %cst_15 = arith.constant 0.000000e+00 : f32
      %18 = vector.broadcast %cst_15 : f32 to vector<16x128xf32>
      %c0_16 = arith.constant 0 : index
      %c0_17 = arith.constant 0 : index
      %19 = vector.load %arg5[%c0_16, %c0_17] : memref<16x128xf32, #tpu.memory_space<vmem>>, vector<16x128xf32>
      tpu.vector_store %arg5[%c0_16, %c0_17], %18 {strides = array<i32>} : memref<16x128xf32, #tpu.memory_space<vmem>>, vector<16x128xf32>,
      %cst_18 = arith.constant 0.000000e+00 : f32
      %20 = vector.broadcast %cst_18 : f32 to vector<16x1xf32>
      %c0_19 = arith.constant 0 : index
      %c0_20 = arith.constant 0 : index
      %21 = vector.load %arg6[%c0_19, %c0_20] : memref<16x1xf32, #tpu.memory_space<vmem>>, vector<16x1xf32>
      tpu.vector_store %arg6[%c0_19, %c0_20], %20 {strides = array<i32>} : memref<16x1xf32, #tpu.memory_space<vmem>>, vector<16x1xf32>,
    } else {
    }
    %c0 = arith.constant 0 : index
    %c0_1 = arith.constant 0 : index
    %3 = vector.load %arg2[%c0, %c0_1] : memref<16x128xbf16, #tpu.memory_space<vmem>>, vector<16x128xbf16>
    %c0_2 = arith.constant 0 : index
    %c0_3 = arith.constant 0 : index
    %4 = vector.load %arg6[%c0_2, %c0_3] : memref<16x1xf32, #tpu.memory_space<vmem>>, vector<16x1xf32>
    %5 = arith.extf %3 : vector<16x128xbf16> to vector<16x128xf32>
    %cst = arith.constant dense<0.000000e+00> : vector<16xf32>
    %6 = vector.multi_reduction <add>, %5, %cst [1] : vector<16x128xf32> to vector<16xf32>
    %7 = vector.shape_cast %6 : vector<16xf32> to vector<16x1xf32>
    %8 = arith.addf %4, %7 : vector<16x1xf32>
    %c0_4 = arith.constant 0 : index
    %c0_5 = arith.constant 0 : index
    %9 = vector.load %arg6[%c0_4, %c0_5] : memref<16x1xf32, #tpu.memory_space<vmem>>, vector<16x1xf32>
    tpu.vector_store %arg6[%c0_4, %c0_5], %8 {strides = array<i32>} : memref<16x1xf32, #tpu.memory_space<vmem>>, vector<16x1xf32>,
    %c0_6 = arith.constant 0 : index
    %c0_7 = arith.constant 0 : index
    %10 = vector.load %arg5[%c0_6, %c0_7] : memref<16x128xf32, #tpu.memory_space<vmem>>, vector<16x128xf32>
    %c0_8 = arith.constant 0 : index
    %c0_9 = arith.constant 0 : index
    %11 = vector.load %arg3[%c0_8, %c0_9] : memref<128x128xbf16, #tpu.memory_space<vmem>>, vector<128x128xbf16>
    %cst_10 = arith.constant dense<0.000000e+00> : vector<16x128xf32>
    %12 = tpu.matmul %3, %11, %cst_10 {dimension_numbers = #tpu.dot_dimension_numbers<[1], [0], [0], [1], [0, 0, 1, 1], [], []>} : vector<16x128xbf16>, vector<128x128xbf16>, vector<16x128xf32> -> vector<16x128xf32>
    %13 = arith.addf %10, %12 : vector<16x128xf32>
    %c0_11 = arith.constant 0 : index
    %c0_12 = arith.constant 0 : index
    %14 = vector.load %arg5[%c0_11, %c0_12] : memref<16x128xf32, #tpu.memory_space<vmem>>, vector<16x128xf32>
    tpu.vector_store %arg5[%c0_11, %c0_12], %13 {strides = array<i32>} : memref<16x128xf32, #tpu.memory_space<vmem>>, vector<16x128xf32>,
    %c0_i32_13 = arith.constant 0 : i32
    %15 = arith.cmpi eq, %arg1, %c0_i32_13 : i32
    %16 = arith.extui %15 : i1 to i32
    %c0_i32_14 = arith.constant 0 : i32
    %17 = arith.cmpi ne, %16, %c0_i32_14 : i32
    scf.if %17 {
      %c0_15 = arith.constant 0 : index
      %c0_16 = arith.constant 0 : index
      %18 = vector.load %arg6[%c0_15, %c0_16] : memref<16x1xf32, #tpu.memory_space<vmem>>, vector<16x1xf32>
      %cst_17 = arith.constant 1.000000e+00 : f32
      %19 = vector.broadcast %cst_17 : f32 to vector<16x1xf32>
      %20 = arith.maximumf %18, %19 : vector<16x1xf32>
      %21 = tpu.reciprocal %20 {approx = true} : vector<16x1xf32> -> vector<16x1xf32>
      %c0_18 = arith.constant 0 : index
      %c0_19 = arith.constant 0 : index
      %22 = vector.load %arg5[%c0_18, %c0_19] : memref<16x128xf32, #tpu.memory_space<vmem>>, vector<16x128xf32>
      %23 = vector.broadcast %21 : vector<16x1xf32> to vector<16x128xf32>
      %24 = arith.mulf %22, %23 : vector<16x128xf32>
      %c0_20 = arith.constant 0 : index
      %c0_21 = arith.constant 0 : index
      %25 = vector.load %arg4[%c0_20, %c0_21] : memref<16x128xf32, #tpu.memory_space<vmem>>, vector<16x128xf32>
      tpu.vector_store %arg4[%c0_20, %c0_21], %24 {strides = array<i32>} : memref<16x128xf32, #tpu.memory_space<vmem>>, vector<16x128xf32>,
    } else {
    }
    return
  }
  func.func @transform_0(%arg0: i32, %arg1: i32) -> (i32, i32) {
    %c0_i32 = arith.constant 0 : i32
    return %arg0, %arg1 : i32, i32
  }
  func.func @transform_1(%arg0: i32, %arg1: i32) -> (i32, i32) {
    %c0_i32 = arith.constant 0 : i32
    %c0_i32_0 = arith.constant 0 : i32
    return %arg1, %c0_i32 : i32, i32
  }
  func.func @transform_2(%arg0: i32, %arg1: i32) -> (i32, i32) {
    %c0_i32 = arith.constant 0 : i32
    %c0_i32_0 = arith.constant 0 : i32
    return %arg0, %c0_i32 : i32, i32
  }
}

</mosaic_0001>

<bundles_post_ra>
// kernel: tpu_custom_call.1
= control target key start
LH: loop header
LB: loop body
LE: loop exit
PB: predicated region body
PF: predicated region fallthrough
CT: control target
= control target key end

     0   :  { %7 = vsyncpa [#allocation5], 0  ;;  %s378_s0 = inlined_call_operand.hbm [shape: bf16[16,128], index: 0, kind: input, shape index: {}]   ;;  %s379_s1 = inlined_call_operand.hbm [shape: bf16[128,128], index: 1, kind: input, shape index: {}]   ;;  %s380_s2 = inlined_call_operand.hbm [shape: f32[16,128], index: 2, kind: output, shape index: {}]  }
   0x1   :  { %8 = vsyncpa [#allocation8], 0 }
   0x2   :  { %9 = vsyncpa [#allocation6], 0  ;;  %s14_s11 = sshll.u32 %s378_s0, 4  ;;  %s341_s12 = smov [#allocation4]   ;;  %s15_s11 = int_to_ptr.hbm [resolvable:$true] %s14_s11 }
   0x3   :  { %s16_s13 = sshll.u32 %s341_s12, 4  ;;  %s27_s16 = sshll.u32 %s379_s1, 4  ;;  %s17_s13 = int_to_ptr.vmem [resolvable:$true] %s16_s13  ;;  %s28_s16 = int_to_ptr.hbm [resolvable:$true] %s27_s16 }
   0x4   :  { %s342_s17 = smov 64   ;;  %s343_s18 = smov 4  }
   0x5   :  { %22 = dma.hbm_to_vmem [thread:$0]  %s15_s11, 128, %s17_s13, [#allocation5], %s342_s17, %s342_s17, %s343_s18  }
   0x6   :  { %s344_s19 = smov [#allocation7]  }
   0x7   :  { %s29_s20 = sshll.u32 %s344_s19, 4  ;;  %s30_s20 = int_to_ptr.vmem [resolvable:$true] %s29_s20 }
   0x8   :  { %35 = dma.hbm_to_vmem [thread:$0]  %s28_s16, 1024, %s30_s20, [#allocation8], %s342_s17, %s342_s17, %s343_s18  }
   0x9   :  { %335 = dma.done.wait [#allocation5], 128  }
   0xa   :  { %336 = vsyncadd [#allocation5], 4294967168 }
   0xb   :  { %337 = dma.done.wait [#allocation8], 1024  }
   0xc   :  { %338 = vsyncadd [#allocation8], 4294966272  ;;  %vm50_vm0 = vcmask 7168   ;;  %v345_v0 = vmov 0.0   ;;  %v53_v1 = vld [vmem:[#allocation4] sm:$0xff]   ;;  %v246_v4 = vld [vmem:[#allocation7 + $0x30] sm:$0xff] }
   0xd   :  { %51 = vst.msk [vmem:[#allocation3] sm:$0xff] %vm50_vm0, %v345_v0  ;;  %v247_v2 = vld [vmem:[#allocation7 + $0x38] sm:$0xff]  ;;  %v57_v3 = vunpack.c.l.bf16 %v53_v1  ;;  %v245_v5 = vld [vmem:[#allocation7 + $0x28] sm:$0xff]  ;;  %v58_v6 = vunpack.c.h.bf16 %v53_v1  ;;  %v244_v7 = vld [vmem:[#allocation7 + $0x20] sm:$0xff]  ;;  %v346_v13 = vmov 0   ;;  %s347_s0 = smov [#allocation9]  }
   0xe   :  { %52 = vst.msk [vmem:[#allocation3 + $0x8] sm:$0xff] %vm50_vm0, %v345_v0  ;;  %140 = vmatpush.bf16.msra.mxu0 %v247_v2  ;;  %v243_v8 = vld [vmem:[#allocation7 + $0x18] sm:$0xff]  ;;  %v242_v9 = vld [vmem:[#allocation7 + $0x10] sm:$0xff]  ;;  %v241_v10 = vld [vmem:[#allocation7 + $0x8] sm:$0xff]  ;;  %257 = vset.pattern.permute.xlu1 %v346_v13  ;;  %s187_s1 = sshll.u32 %s347_s0, 4  ;;  %s189_s23 = sshll.u32 %s380_s2, 4  ;;  %s188_s1 = int_to_ptr.vmem [resolvable:$true] %s187_s1  ;;  %s190_s23 = int_to_ptr.hbm [resolvable:$true] %s189_s23 }
   0xf   :  { %59 = vadd.xlane.f32.xlu0 %v57_v3  ;;  %v240_v11 = vld [vmem:[#allocation7] sm:$0xff]  ;;  %v239_v12 = vld [vmem:[#allocation4] sm:$0xff]  ;;  %s348_s24 = smov 128   ;;  %s349_s25 = smov 8  }
  0x10   :  { %258 = vset.pattern.permute.xlu0 %v346_v13 }
  0x12   :  { %141 = vmatpush.bf16.msra.mxu0 %v246_v4 }
  0x14   :  { %v55_v14 = vld [vmem:[#allocation3] sm:$0xff] }
  0x15   :  { %v56_v17 = vld [vmem:[#allocation3 + $0x8] sm:$0xff] }
  0x16   :  { %142 = vmatpush.bf16.msra.mxu0 %v245_v5 }
  0x17   :  { %61 = vadd.xlane.f32.xlu0 %v58_v6 }
  0x1a   :  { %143 = vmatpush.bf16.msra.mxu0 %v244_v7 }
  0x1e   :  { %144 = vmatpush.bf16.msra.mxu0 %v243_v8 }
  0x22   :  { %145 = vmatpush.bf16.msra.mxu0 %v242_v9 }
  0x26   :  { %146 = vmatpush.bf16.msra.mxu0 %v241_v10 }
  0x2a   :  { %147 = vmatpush.bf16.msra.mxu0 %v240_v11 }
  0x2d   :  { %148 = vmatmul.bf16.vlgmr.msra.gmra.mxu0 %v239_v12 }
  0x82   :  { %v60_v15 = vpop.xlane.xlu0 %59 }
  0x83   :  { %v63_v16 = vadd.f32 %v60_v15, %v55_v14 }
  0x85   :  { %66 = vst.msk [vmem:[#allocation3] sm:$0xff] %vm50_vm0, %v63_v16 }
  0x8a   :  { %v62_v18 = vpop.xlane.xlu0 %61 }
  0x8b   :  { %v64_v19 = vadd.f32 %v62_v18, %v56_v17 }
  0x8c   :  { %v161_v20 = vld [vmem:[#allocation3] sm:$0xff] }
  0x8d   :  { %67 = vst.msk [vmem:[#allocation3 + $0x8] sm:$0xff] %vm50_vm0, %v64_v19  ;;  %v163_v21 = vmax.f32 %v161_v20, 1.0 }
  0x8f   :  { %259 = vrcp.f32 %v163_v21 }
  0x94   :  { %v162_v22 = vld [vmem:[#allocation3 + $0x8] sm:$0xff] }
  0x95   :  { %v260_v23 = vpop.eup %259  ;;  %v164_v24 = vmax.f32 %v162_v22, 1.0 }
  0x96   :  { %171 = vperm.xlu1 %257, %v260_v23  }
  0x97   :  { %261 = vrcp.f32 %v164_v24 }
  0x9d   :  { %v262_v25 = vpop.eup %261 }
  0x9e   :  { %176 = vperm.xlu1 %257, %v262_v25  }
  0xaa   :  { %v149_v26 = vpop.f32.mrf.mxu0 }
  0xb2   :  { %v151_v29 = vpop.f32.mrf.mxu0 }
 0x108   :  { %v172_v27 = vpop.permute.xlu1 %171 }
 0x109   :  { %v179_v28 = vmul.f32 %v172_v27, %v149_v26 }
 0x10b   :  { %181 = vst [vmem:[#allocation9] sm:$0xff] %v179_v28 }
 0x110   :  { %v177_v30 = vpop.permute.xlu1 %176 }
 0x111   :  { %v180_v31 = vmul.f32 %v177_v30, %v151_v29 }
 0x113   :  { %182 = vst [vmem:[#allocation9 + $0x8] sm:$0xff] %v180_v31 }
 0x114   :  { %195 = dma.vmem_to_hbm [thread:$0]  %s188_s1, 256, %s190_s23, [#allocation6], %s348_s24, %s348_s24, %s349_s25  }
 0x115   :  { %339 = dma.done.wait [#allocation6], 256  }
 0x116   :  { %340 = vsyncadd [#allocation6], 4294967040 }
 0x117   :  { %200 = vsyncpa [#allocation5], 1 }
 0x118   :  { %201 = vsyncpa [#allocation8], 1 }
 0x119   :  { %202 = vsyncpa [#allocation6], 1 }

</bundles_post_ra>
